<compile_context>
chip_gen: v5e
topology: v5e:2x2
jax: 0.10.0
libtpu: 0.0.40
codegen_flags: <defaults>
</compile_context>

<pallas_src>
import jax
import jax.numpy as jnp
from jax.experimental import pallas as pl
from jax.experimental.pallas import tpu as pltpu


def _quantile_kernel(state_ref, tau_ref, w1_ref, b1_ref, w2_ref, b2_ref, out_ref):
    """One grid step == TB batch elements (TB*N fused rows).

    state_ref: (TB, D)       tau_ref: (TB, N, D)
    w1_ref:    (D, H)        b1_ref:  (1, H)
    w2_ref:    (H, A_pad)    b2_ref:  (1, A_pad)
    out_ref:   (TB*N, A_pad)
    """
    state = state_ref[...]                              # (TB, D)
    tau = tau_ref[...]                                  # (TB, N, D)
    tb, n, d = tau.shape

    # Fused "embedding" multiply, flattened so both matmuls run with M = TB*N.
    emb = (state[:, None, :] * tau).reshape(tb * n, d)  # (TB*N, D)

    # Hidden layer: Linear + bias + ReLU (f32 accumulation on the MXU).
    h = jnp.dot(emb.astype(w1_ref.dtype), w1_ref[...],
                preferred_element_type=jnp.float32)      # (TB*N, H)
    h = jnp.maximum(h + b1_ref[...], 0.0)                # bias broadcast once/tile

    # Output layer: Linear + bias, lane-dense (A zero-padded to 128 lanes).
    q = jnp.dot(h.astype(w2_ref.dtype), w2_ref[...],
                preferred_element_type=jnp.float32)      # (TB*N, A_pad)
    q = q + b2_ref[...]

    out_ref[...] = q.astype(out_ref.dtype)


def quantile_network_forward(state_embeddings, tau_embeddings, params,
                             *, rows_per_tile=256, matmul_dtype=None):
    """Fused Pallas forward. Returns (B, N, num_actions) float32.

    rows_per_tile: target number of fused rows (TB*N) per grid step.
    matmul_dtype:  optional (e.g. jnp.bfloat16) dtype for MXU inputs on v6e/v7x;
                   accumulation stays float32.
    """
    w1, b1, w2, b2 = params
    B, D = state_embeddings.shape
    _, N, _ = tau_embeddings.shape
    H = w1.shape[1]
    A = w2.shape[1]

    # --- Pad the output feature dim to a lane-dense multiple of 128 (zero-pad
    #     W2/b2 so padded lanes are exactly zero, then slice after the call). ---
    A_pad = max(128, pl.cdiv(A, 128) * 128)
    w2p = jnp.zeros((H, A_pad), w2.dtype).at[:, :A].set(w2)
    b2p = jnp.zeros((1, A_pad), b2.dtype).at[:, :A].set(b2.reshape(1, A))
    b1_2d = b1.reshape(1, H)

    if matmul_dtype is not None:
        w1 = w1.astype(matmul_dtype)
        w2p = w2p.astype(matmul_dtype)

    # --- Batch tiling: aim for >= rows_per_tile fused rows per grid step. ---
    TB = max(1, rows_per_tile // max(N, 1))
    if TB >= B:
        TB = B                        # whole batch in one (full-extent) tile
    else:
        TB = max(8, (TB // 8) * 8)    # sublane-aligned batch tile
    B_pad = pl.cdiv(B, TB) * TB
    if B_pad != B:
        state_embeddings = jnp.pad(state_embeddings, ((0, B_pad - B), (0, 0)))
        tau_embeddings = jnp.pad(tau_embeddings,
                                 ((0, B_pad - B), (0, 0), (0, 0)))
    grid = (B_pad // TB,)

    # --- VMEM budget hint (resident weights are double-buffered even with a
    #     constant index_map; keep the estimate under the v7x 64 MiB VMEM). ---
    f32b = 4
    wb = jnp.dtype(w1.dtype).itemsize
    est = (2 * f32b * (TB * D + TB * N * D)          # state + tau tiles (x2 bufs)
           + 2 * wb * (D * H + H * A_pad)            # W1 + W2 (x2 bufs)
           + 2 * f32b * (H + A_pad)                  # biases
           + 2 * f32b * TB * N * A_pad               # output tile (x2 bufs)
           + 2 * f32b * TB * N * H)                  # hidden intermediate slack
    vmem_limit = int(min(max(32 * 1024 * 1024, 2 * est), 48 * 1024 * 1024))

    out_flat = pl.pallas_call(
        _quantile_kernel,
        out_shape=jax.ShapeDtypeStruct((B_pad * N, A_pad), jnp.float32),
        grid_spec=pltpu.PrefetchScalarGridSpec(
            num_scalar_prefetch=0,
            grid=grid,
            in_specs=[
                pl.BlockSpec((TB, D), lambda b: (b, 0)),        # state
                pl.BlockSpec((TB, N, D), lambda b: (b, 0, 0)),  # tau
                pl.BlockSpec((D, H), lambda b: (0, 0)),         # W1 (resident)
                pl.BlockSpec((1, H), lambda b: (0, 0)),         # b1
                pl.BlockSpec((H, A_pad), lambda b: (0, 0)),     # W2 (resident)
                pl.BlockSpec((1, A_pad), lambda b: (0, 0)),     # b2
            ],
            out_specs=pl.BlockSpec((TB * N, A_pad), lambda b: (b, 0)),
        ),
        compiler_params=pltpu.CompilerParams(
            dimension_semantics=("parallel",),
            vmem_limit_bytes=vmem_limit,
        ),
    )(state_embeddings, tau_embeddings, w1, b1_2d, w2p, b2p)

    # Drop batch padding rows and the lane padding on the action dim.
    return out_flat[: B * N, :A].reshape(B, N, A)


def init_params(key, embedding_dim, hidden, num_actions):
    """Deterministic nn.Linear-style init: U(-1/sqrt(in), 1/sqrt(in))."""
    k1, k2, k3, k4 = jax.random.split(key, 4)
    bound1 = 1.0 / jnp.sqrt(embedding_dim)
    bound2 = 1.0 / jnp.sqrt(hidden)
    w1 = jax.random.uniform(k1, (embedding_dim, hidden), jnp.float32, -bound1, bound1)
    b1 = jax.random.uniform(k2, (hidden,), jnp.float32, -bound1, bound1)
    w2 = jax.random.uniform(k3, (hidden, num_actions), jnp.float32, -bound2, bound2)
    b2 = jax.random.uniform(k4, (num_actions,), jnp.float32, -bound2, bound2)
    return w1, b1, w2, b2


def reference_forward(state_embeddings, tau_embeddings, params):
    """Plain-JAX reference mirroring the PyTorch module."""
    w1, b1, w2, b2 = params
    B, D = state_embeddings.shape
    N = tau_embeddings.shape[1]
    emb = (state_embeddings[:, None, :] * tau_embeddings).reshape(B * N, D)
    h = jnp.maximum(emb @ w1 + b1, 0.0)
    q = h @ w2 + b2
    return q.reshape(B, N, w2.shape[1])


if __name__ == "__main__":
    # Small shapes consistent with the module's forward contract.
    batch = 2
    N = 8                  # number of quantile fractions
    embedding_dim = 128    # (synthetic; module default is 7*7*64)
    hidden = 256
    num_actions = 8

    key = jax.random.PRNGKey(0)
    k_state, k_tau, k_params = jax.random.split(key, 3)

    state_embeddings = jax.random.normal(k_state, (batch, embedding_dim), jnp.float32)
    tau_embeddings = jax.random.normal(k_tau, (batch, N, embedding_dim), jnp.float32)
    params = init_params(k_params, embedding_dim, hidden, num_actions)

    # 1) Default path: whole (tiny) batch in one tile.
    out = quantile_network_forward(state_embeddings, tau_embeddings, params)
    out = jax.block_until_ready(out)
    ref = reference_forward(state_embeddings, tau_embeddings, params)
    assert out.shape == (batch, N, num_actions)
    assert jnp.allclose(out, ref, atol=1e-4, rtol=1e-4)

    # 2) Multi-step grid + batch-padding path (B=10, 8-row batch tiles -> grid=(2,)).
    batch2 = 10
    k_s2, k_t2 = jax.random.split(jax.random.PRNGKey(1), 2)
    state2 = jax.random.normal(k_s2, (batch2, embedding_dim), jnp.float32)
    tau2 = jax.random.normal(k_t2, (batch2, N, embedding_dim), jnp.float32)
    out2 = jax.block_until_ready(
        quantile_network_forward(state2, tau2, params, rows_per_tile=64))
    ref2 = reference_forward(state2, tau2, params)
    assert out2.shape == (batch2, N, num_actions)
    assert jnp.allclose(out2, ref2, atol=1e-4, rtol=1e-4)

    # 3) Optional bf16 matmul inputs (v6e/v7x MXU peak), f32 accumulation.
    out_bf16 = jax.block_until_ready(
        quantile_network_forward(state_embeddings, tau_embeddings, params,
                                 matmul_dtype=jnp.bfloat16))
    assert jnp.allclose(out_bf16, ref, atol=5e-2, rtol=5e-2)

    # TODO(synk): dueling_net / noisy_net branches not exercised (module defaults are False).
    print("KERNEL_OK")
</pallas_src>

<mosaic_0001>
module attributes {stable_mosaic.version = 11 : i64} {
  func.func @_quantile_kernel(%arg0: i32, %arg1: memref<2x128xf32, #tpu.memory_space<vmem>>, %arg2: memref<2x8x128xf32, #tpu.memory_space<vmem>>, %arg3: memref<128x256xf32, #tpu.memory_space<vmem>>, %arg4: memref<1x256xf32, #tpu.memory_space<vmem>>, %arg5: memref<256x128xf32, #tpu.memory_space<vmem>>, %arg6: memref<1x128xf32, #tpu.memory_space<vmem>>, %arg7: memref<16x128xf32, #tpu.memory_space<vmem>>) attributes {dimension_semantics = [#tpu.dimension_semantics<parallel>], iteration_bounds = array<i64: 1>, scalar_prefetch = 0 : i64, scratch_operands = 0 : i64, tpu.core_type = #tpu.core_type<tc>, window_params = [{transform_indices = @transform_0, window_bounds = array<i64: 2, 128>}, {transform_indices = @transform_1, window_bounds = array<i64: 2, 8, 128>}, {pipeline_mode = #tpu.pipeline_mode<synchronous>, transform_indices = @transform_2, window_bounds = array<i64: 128, 256>}, {pipeline_mode = #tpu.pipeline_mode<synchronous>, transform_indices = @transform_3, window_bounds = array<i64: 1, 256>}, {pipeline_mode = #tpu.pipeline_mode<synchronous>, transform_indices = @transform_4, window_bounds = array<i64: 256, 128>}, {pipeline_mode = #tpu.pipeline_mode<synchronous>, transform_indices = @transform_5, window_bounds = array<i64: 1, 128>}, {transform_indices = @transform_6, window_bounds = array<i64: 16, 128>}]} {
    %c0 = arith.constant 0 : index
    %c0_0 = arith.constant 0 : index
    %0 = vector.load %arg1[%c0, %c0_0] : memref<2x128xf32, #tpu.memory_space<vmem>>, vector<2x128xf32>
    %c0_1 = arith.constant 0 : index
    %c0_2 = arith.constant 0 : index
    %c0_3 = arith.constant 0 : index
    %1 = vector.load %arg2[%c0_1, %c0_2, %c0_3] : memref<2x8x128xf32, #tpu.memory_space<vmem>>, vector<2x8x128xf32>
    %2 = vector.shape_cast %0 : vector<2x128xf32> to vector<2x1x128xf32>
    %3 = vector.broadcast %2 : vector<2x1x128xf32> to vector<2x8x128xf32>
    %4 = arith.mulf %3, %1 : vector<2x8x128xf32>
    %5 = vector.shape_cast %4 : vector<2x8x128xf32> to vector<16x128xf32>
    %c0_4 = arith.constant 0 : index
    %c0_5 = arith.constant 0 : index
    %6 = vector.load %arg3[%c0_4, %c0_5] : memref<128x256xf32, #tpu.memory_space<vmem>>, vector<128x256xf32>
    %cst = arith.constant dense<0.000000e+00> : vector<16x256xf32>
    %7 = tpu.matmul %5, %6, %cst {dimension_numbers = #tpu.dot_dimension_numbers<[1], [0], [0], [1], [0, 0, 1, 1], [], []>} : vector<16x128xf32>, vector<128x256xf32>, vector<16x256xf32> -> vector<16x256xf32>
    %c0_6 = arith.constant 0 : index
    %c0_7 = arith.constant 0 : index
    %8 = vector.load %arg4[%c0_6, %c0_7] : memref<1x256xf32, #tpu.memory_space<vmem>>, vector<1x256xf32>
    %9 = vector.broadcast %8 : vector<1x256xf32> to vector<16x256xf32>
    %10 = arith.addf %7, %9 : vector<16x256xf32>
    %cst_8 = arith.constant 0.000000e+00 : f32
    %11 = vector.broadcast %cst_8 : f32 to vector<16x256xf32>
    %12 = arith.maximumf %10, %11 : vector<16x256xf32>
    %c0_9 = arith.constant 0 : index
    %c0_10 = arith.constant 0 : index
    %13 = vector.load %arg5[%c0_9, %c0_10] : memref<256x128xf32, #tpu.memory_space<vmem>>, vector<256x128xf32>
    %cst_11 = arith.constant dense<0.000000e+00> : vector<16x128xf32>
    %14 = tpu.matmul %12, %13, %cst_11 {dimension_numbers = #tpu.dot_dimension_numbers<[1], [0], [0], [1], [0, 0, 1, 1], [], []>} : vector<16x256xf32>, vector<256x128xf32>, vector<16x128xf32> -> vector<16x128xf32>
    %c0_12 = arith.constant 0 : index
    %c0_13 = arith.constant 0 : index
    %15 = vector.load %arg6[%c0_12, %c0_13] : memref<1x128xf32, #tpu.memory_space<vmem>>, vector<1x128xf32>
    %16 = vector.broadcast %15 : vector<1x128xf32> to vector<16x128xf32>
    %17 = arith.addf %14, %16 : vector<16x128xf32>
    %c0_14 = arith.constant 0 : index
    %c0_15 = arith.constant 0 : index
    %18 = vector.load %arg7[%c0_14, %c0_15] : memref<16x128xf32, #tpu.memory_space<vmem>>, vector<16x128xf32>
    tpu.vector_store %arg7[%c0_14, %c0_15], %17 {strides = array<i32>} : memref<16x128xf32, #tpu.memory_space<vmem>>, vector<16x128xf32>,
    return
  }
  func.func @transform_0(%arg0: i32) -> (i32, i32) {
    %c0_i32 = arith.constant 0 : i32
    %c0_i32_0 = arith.constant 0 : i32
    return %arg0, %c0_i32 : i32, i32
  }
  func.func @transform_1(%arg0: i32) -> (i32, i32, i32) {
    %c0_i32 = arith.constant 0 : i32
    %c0_i32_0 = arith.constant 0 : i32
    %c0_i32_1 = arith.constant 0 : i32
    return %arg0, %c0_i32, %c0_i32_0 : i32, i32, i32
  }
  func.func @transform_2(%arg0: i32) -> (i32, i32) {
    %c0_i32 = arith.constant 0 : i32
    %c0_i32_0 = arith.constant 0 : i32
    %c0_i32_1 = arith.constant 0 : i32
    return %c0_i32, %c0_i32_0 : i32, i32
  }
  func.func @transform_3(%arg0: i32) -> (i32, i32) {
    %c0_i32 = arith.constant 0 : i32
    %c0_i32_0 = arith.constant 0 : i32
    %c0_i32_1 = arith.constant 0 : i32
    return %c0_i32, %c0_i32_0 : i32, i32
  }
  func.func @transform_4(%arg0: i32) -> (i32, i32) {
    %c0_i32 = arith.constant 0 : i32
    %c0_i32_0 = arith.constant 0 : i32
    %c0_i32_1 = arith.constant 0 : i32
    return %c0_i32, %c0_i32_0 : i32, i32
  }
  func.func @transform_5(%arg0: i32) -> (i32, i32) {
    %c0_i32 = arith.constant 0 : i32
    %c0_i32_0 = arith.constant 0 : i32
    %c0_i32_1 = arith.constant 0 : i32
    return %c0_i32, %c0_i32_0 : i32, i32
  }
  func.func @transform_6(%arg0: i32) -> (i32, i32) {
    %c0_i32 = arith.constant 0 : i32
    %c0_i32_0 = arith.constant 0 : i32
    return %arg0, %c0_i32 : i32, i32
  }
}

</mosaic_0001>

<bundles_post_ra>
// kernel: tpu_custom_call.1
= control target key start
LH: loop header
LB: loop body
LE: loop exit
PB: predicated region body
PF: predicated region fallthrough
CT: control target
= control target key end

     0   :  { %11 = vsyncpa [#allocation3], 0  ;;  %s501_s0 = inlined_call_operand.hbm [shape: f32[2,128], index: 0, kind: input, shape index: {}]   ;;  %s502_s1 = inlined_call_operand.hbm [shape: f32[2,8,128], index: 1, kind: input, shape index: {}]   ;;  %s503_s2 = inlined_call_operand.hbm [shape: f32[128,256], index: 2, kind: input, shape index: {}]   ;;  %s504_s3 = inlined_call_operand.vmem [shape: f32[1,256], index: 3, kind: input, shape index: {}]   ;;  %s505_s4 = inlined_call_operand.hbm [shape: f32[256,128], index: 4, kind: input, shape index: {}]   ;;  %s506_s5 = inlined_call_operand.vmem [shape: f32[1,128], index: 5, kind: input, shape index: {}]   ;;  %s507_s6 = inlined_call_operand.hbm [shape: f32[16,128], index: 6, kind: output, shape index: {}]  }
   0x1   :  { %12 = vsyncpa [#allocation6], 0 }
   0x2   :  { %13 = vsyncpa [#allocation9], 0  ;;  %s30_s23 = sshll.u32 %s502_s1, 4  ;;  %s31_s23 = int_to_ptr.hbm [resolvable:$true] %s30_s23 }
   0x3   :  { %14 = vsyncpa [#allocation4], 0  ;;  %s427_s24 = smov [#allocation5]   ;;  %s20_s28 = sshll.u32 %s501_s0, 4  ;;  %s21_s28 = int_to_ptr.hbm [resolvable:$true] %s20_s28 }
   0x4   :  { %s32_s25 = sshll.u32 %s427_s24, 4  ;;  %s428_s29 = smov 128   ;;  %s33_s25 = int_to_ptr.vmem [resolvable:$true] %s32_s25 }
   0x5   :  { %s429_s30 = smov 8   ;;  %s430_s7 = smov [#allocation2]  }
   0x6   :  { %38 = dma.hbm_to_vmem [thread:$0]  %s31_s23, 256, %s33_s25, [#allocation6], %s428_s29, %s428_s29, %s429_s30  }
   0x7   :  { %s22_s8 = sshll.u32 %s430_s7, 4  ;;  %s43_s10 = sshll.u32 %s503_s2, 4  ;;  %s23_s8 = int_to_ptr.vmem [resolvable:$true] %s22_s8  ;;  %s44_s10 = int_to_ptr.hbm [resolvable:$true] %s43_s10 }
   0x8   :  { %25 = dma.hbm_to_vmem [thread:$0]  %s21_s28, 32, %s23_s8, [#allocation3]  }
   0x9   :  { %s431_s11 = smov [#allocation7]   ;;  %s58_s14 = sshll.u32 %s505_s4, 4  ;;  %s59_s14 = int_to_ptr.hbm [resolvable:$true] %s58_s14 }
   0xa   :  { %s45_s12 = sshll.u32 %s431_s11, 4  ;;  %s432_s15 = smov 256   ;;  %s46_s12 = int_to_ptr.vmem [resolvable:$true] %s45_s12 }
   0xb   :  { %s433_s16 = smov 16   ;;  %s434_s17 = smov [#allocation8]  }
   0xc   :  { %51 = dma.hbm_to_vmem [thread:$0]  %s44_s10, 4096, %s46_s12, [#allocation6], %s432_s15, %s432_s15, %s433_s16  }
   0xd   :  { %s60_s18 = sshll.u32 %s434_s17, 4  ;;  %s61_s18 = int_to_ptr.vmem [resolvable:$true] %s60_s18 }
   0xe   :  { %66 = dma.hbm_to_vmem [thread:$0]  %s59_s14, 4096, %s61_s18, [#allocation9], %s428_s29, %s428_s29, %s429_s30  }
   0xf   :  { %419 = dma.done.wait [#allocation3], 32  }
  0x10   :  { %420 = vsyncadd [#allocation3], 4294967264 }
  0x11   :  { %421 = dma.done.wait [#allocation6], 4352  }
  0x12   :  { %422 = vsyncadd [#allocation6], 4294962944 }
  0x13   :  { %423 = dma.done.wait [#allocation9], 4096  }
  0x14   :  { %424 = vsyncadd [#allocation9], 4294963200  ;;  %v126_v0 = vld [vmem:[#allocation7 + $0xf0] sm:$0xff]  ;;  %v124_v1 = vld [vmem:[#allocation7 + $0xe0] sm:$0xff]  ;;  %s435_s20 = smov [#allocation10]   ;;  %s274_s24 = sshll.u32 %s507_s6, 4  ;;  %s275_s24 = int_to_ptr.hbm [resolvable:$true] %s274_s24 }
  0x15   :  { %v127_v2 = vld [vmem:[#allocation7 + $0xf8] sm:$0xff]  ;;  %134 = vmatpush.msra.mxu0 %v126_v0  ;;  %v125_v3 = vld [vmem:[#allocation7 + $0xe8] sm:$0xff]  ;;  %v122_v4 = vld [vmem:[#allocation7 + $0xd0] sm:$0xff]  ;;  %s272_s21 = sshll.u32 %s435_s20, 4  ;;  %s273_s21 = int_to_ptr.vmem [resolvable:$true] %s272_s21 }
  0x16   :  { %157 = vmatpush.msra.mxu1 %v127_v2  ;;  %v123_v5 = vld [vmem:[#allocation7 + $0xd8] sm:$0xff]  ;;  %v120_v6 = vld [vmem:[#allocation7 + $0xc0] sm:$0xff]  ;;  %v121_v7 = vld [vmem:[#allocation7 + $0xc8] sm:$0xff] }
  0x17   :  { %135 = vmatpush.msra.mxu0 %v124_v1  ;;  %v118_v8 = vld [vmem:[#allocation7 + $0xb0] sm:$0xff]  ;;  %v119_v9 = vld [vmem:[#allocation7 + $0xb8] sm:$0xff]  ;;  %v116_v10 = vld [vmem:[#allocation7 + $0xa0] sm:$0xff] }
  0x18   :  { %158 = vmatpush.msra.mxu1 %v125_v3  ;;  %v117_v11 = vld [vmem:[#allocation7 + $0xa8] sm:$0xff]  ;;  %v114_v12 = vld [vmem:[#allocation7 + $0x90] sm:$0xff]  ;;  %v115_v13 = vld [vmem:[#allocation7 + $0x98] sm:$0xff] }
  0x19   :  { %136 = vmatpush.msra.mxu0 %v122_v4  ;;  %v112_v14 = vld [vmem:[#allocation7 + $0x80] sm:$0xff]  ;;  %v199_v15 = vld [vmem:[#allocation8 + $0x78] sm:$0xff]  ;;  %v113_v16 = vld [vmem:[#allocation7 + $0x88] sm:$0xff] }
  0x1a   :  { %159 = vmatpush.msra.mxu1 %v123_v5  ;;  %220 = vmatpush.msra.mxu2 %v199_v15  ;;  %v198_v17 = vld [vmem:[#allocation8 + $0x70] sm:$0xff]  ;;  %v215_v18 = vld [vmem:[#allocation8 + $0xf8] sm:$0xff]  ;;  %v197_v19 = vld [vmem:[#allocation8 + $0x68] sm:$0xff] }
  0x1b   :  { %137 = vmatpush.msra.mxu0 %v120_v6  ;;  %v214_v20 = vld [vmem:[#allocation8 + $0xf0] sm:$0xff]  ;;  %v111_v22 = vld [vmem:[#allocation7 + $0x78] sm:$0xff]  ;;  %243 = vmatpush.msra.mxu3 %v215_v18  ;;  %v196_v23 = vld [vmem:[#allocation8 + $0x60] sm:$0xff] }
  0x1c   :  { %160 = vmatpush.msra.mxu1 %v121_v7  ;;  %v110_v21 = vld [vmem:[#allocation7 + $0x70] sm:$0xff]  ;;  %221 = vmatpush.msra.mxu2 %v198_v17  ;;  %v213_v24 = vld [vmem:[#allocation8 + $0xe8] sm:$0xff]  ;;  %v108_v25 = vld [vmem:[#allocation7 + $0x60] sm:$0xff] }
  0x1d   :  { %138 = vmatpush.msra.mxu0 %v118_v8  ;;  %v109_v26 = vld [vmem:[#allocation7 + $0x68] sm:$0xff]  ;;  %244 = vmatpush.msra.mxu3 %v214_v20  ;;  %v195_v27 = vld [vmem:[#allocation8 + $0x58] sm:$0xff]  ;;  %v212_v28 = vld [vmem:[#allocation8 + $0xe0] sm:$0xff] }
  0x1e   :  { %161 = vmatpush.msra.mxu1 %v119_v9  ;;  %222 = vmatpush.msra.mxu2 %v197_v19  ;;  %v106_v29 = vld [vmem:[#allocation7 + $0x50] sm:$0xff]  ;;  %v107_v30 = vld [vmem:[#allocation7 + $0x58] sm:$0xff]  ;;  %v104_v33 = vld [vmem:[#allocation7 + $0x40] sm:$0xff] }
  0x1f   :  { %139 = vmatpush.msra.mxu0 %v116_v10  ;;  %245 = vmatpush.msra.mxu3 %v213_v24  ;;  %v194_v31 = vld [vmem:[#allocation8 + $0x50] sm:$0xff]  ;;  %v211_v32 = vld [vmem:[#allocation8 + $0xd8] sm:$0xff]  ;;  %v105_v34 = vld [vmem:[#allocation7 + $0x48] sm:$0xff] }
  0x20   :  { %162 = vmatpush.msra.mxu1 %v117_v11  ;;  %223 = vmatpush.msra.mxu2 %v196_v23  ;;  %v85_v35 = vld [vmem:[#allocation2] sm:$0x3]  ;;  %v210_v37 = vld [vmem:[#allocation8 + $0xd0] sm:$0xff]  ;;  %v103_v39 = vld [vmem:[#allocation7 + $0x38] sm:$0xff] }
  0x21   :  { %140 = vmatpush.msra.mxu0 %v114_v12  ;;  %246 = vmatpush.msra.mxu3 %v212_v28  ;;  %v193_v36 = vld [vmem:[#allocation8 + $0x48] sm:$0xff]  ;;  %v102_v38 = vld [vmem:[#allocation7 + $0x30] sm:$0xff]  ;;  %v192_v40 = vld [vmem:[#allocation8 + $0x40] sm:$0xff]  ;;  %v90_v44 = vperm.slane %v85_v35, 0  ;;  %v89_v55 = vrot.slane %v85_v35, 1 }
  0x22   :  { %163 = vmatpush.msra.mxu1 %v115_v13  ;;  %224 = vmatpush.msra.mxu2 %v195_v27  ;;  %v209_v41 = vld [vmem:[#allocation8 + $0xc8] sm:$0xff]  ;;  %v100_v42 = vld [vmem:[#allocation7 + $0x20] sm:$0xff]  ;;  %v86_v45 = vld [vmem:[#allocation5] sm:$0xff] }
  0x23   :  { %141 = vmatpush.msra.mxu0 %v112_v14  ;;  %247 = vmatpush.msra.mxu3 %v211_v32  ;;  %v101_v43 = vld [vmem:[#allocation7 + $0x28] sm:$0xff]  ;;  %v191_v46 = vld [vmem:[#allocation8 + $0x38] sm:$0xff]  ;;  %v208_v47 = vld [vmem:[#allocation8 + $0xc0] sm:$0xff]  ;;  %v94_v53 = vmul.f32 %v90_v44, %v86_v45  ;;  %v91_v58 = vperm.slane %v89_v55, 0 }
  0x24   :  { %164 = vmatpush.msra.mxu1 %v113_v16  ;;  %225 = vmatpush.msra.mxu2 %v194_v31  ;;  %v98_v48 = vld [vmem:[#allocation7 + $0x10] sm:$0xff]  ;;  %v99_v49 = vld [vmem:[#allocation7 + $0x18] sm:$0xff]  ;;  %v96_v52 = vld [vmem:[#allocation7] sm:$0xff] }
  0x25   :  { %142 = vmatpush.msra.mxu0 %v110_v21  ;;  %248 = vmatpush.msra.mxu3 %v210_v37  ;;  %v190_v50 = vld [vmem:[#allocation8 + $0x30] sm:$0xff]  ;;  %v207_v51 = vld [vmem:[#allocation8 + $0xb8] sm:$0xff]  ;;  %v97_v54 = vld [vmem:[#allocation7 + $0x8] sm:$0xff] }
  0x26   :  { %165 = vmatpush.msra.mxu1 %v111_v22  ;;  %226 = vmatpush.msra.mxu2 %v193_v36  ;;  %v189_v56 = vld [vmem:[#allocation8 + $0x28] sm:$0xff]  ;;  %v206_v57 = vld [vmem:[#allocation8 + $0xb0] sm:$0xff]  ;;  %v188_v59 = vld [vmem:[#allocation8 + $0x20] sm:$0xff] }
  0x27   :  { %143 = vmatpush.msra.mxu0 %v108_v25  ;;  %249 = vmatpush.msra.mxu3 %v209_v41  ;;  %v205_v60 = vld [vmem:[#allocation8 + $0xa8] sm:$0xff]  ;;  %v87_v61 = vld [vmem:[#allocation5 + $0x8] sm:$0xff]  ;;  %v204_v63 = vld [vmem:[#allocation8 + $0xa0] sm:$0xff] }
  0x28   :  { %166 = vmatpush.msra.mxu1 %v109_v26  ;;  %227 = vmatpush.msra.mxu2 %v192_v40  ;;  %v187_v62 = vld [vmem:[#allocation8 + $0x18] sm:$0xff]  ;;  %v95_v0 = vmul.f32 %v91_v58, %v87_v61  ;;  %v186_v1 = vld [vmem:[#allocation8 + $0x10] sm:$0xff]  ;;  %v185_v3 = vld [vmem:[#allocation8 + $0x8] sm:$0xff] }
  0x29   :  { %144 = vmatpush.msra.mxu0 %v106_v29  ;;  %250 = vmatpush.msra.mxu3 %v208_v47  ;;  %v203_v2 = vld [vmem:[#allocation8 + $0x98] sm:$0xff]  ;;  %v202_v4 = vld [vmem:[#allocation8 + $0x90] sm:$0xff]  ;;  %v184_v5 = vld [vmem:[#allocation8] sm:$0xff] }
  0x2a   :  { %167 = vmatpush.msra.mxu1 %v107_v30  ;;  %228 = vmatpush.msra.mxu2 %v191_v46  ;;  %v201_v6 = vld [vmem:[#allocation8 + $0x88] sm:$0xff]  ;;  %v200_v7 = vld [vmem:[#allocation8 + $0x80] sm:$0xff] }
  0x2b   :  { %145 = vmatpush.msra.mxu0 %v104_v33  ;;  %251 = vmatpush.msra.mxu3 %v207_v51  ;;  %v128_v8 = vld [vmem:[%s504_s3] sm:$0x3] }
  0x2c   :  { %168 = vmatpush.msra.mxu1 %v105_v34  ;;  %229 = vmatpush.msra.mxu2 %v190_v50  ;;  %v130_v9 = vperm.slane %v128_v8, 0  ;;  %v131_v10 = vperm.slane %v128_v8, 1  ;;  %v298_v23 = vld [vmem:[%s506_s5] ss:$0 sm:$0xff] }
  0x2d   :  { %146 = vmatpush.msra.mxu0 %v102_v38  ;;  %252 = vmatpush.msra.mxu3 %v206_v57 }
  0x2e   :  { %169 = vmatpush.msra.mxu1 %v103_v39  ;;  %230 = vmatpush.msra.mxu2 %v189_v56 }
  0x2f   :  { %147 = vmatpush.msra.mxu0 %v100_v42  ;;  %253 = vmatpush.msra.mxu3 %v205_v60 }
  0x30   :  { %170 = vmatpush.msra.mxu1 %v101_v43  ;;  %231 = vmatpush.msra.mxu2 %v188_v59 }
  0x31   :  { %148 = vmatpush.msra.mxu0 %v98_v48  ;;  %254 = vmatpush.msra.mxu3 %v204_v63 }
  0x32   :  { %171 = vmatpush.msra.mxu1 %v99_v49  ;;  %232 = vmatpush.msra.mxu2 %v187_v62 }
  0x33   :  { %149 = vmatpush.msra.mxu0 %v96_v52  ;;  %255 = vmatpush.msra.mxu3 %v203_v2 }
  0x34   :  { %172 = vmatpush.msra.mxu1 %v97_v54  ;;  %150 = vmatmul.f32.vlgmr.msra.gmra.mxu0 %v94_v53 }
  0x35   :  { %173 = vmatmul.f32.vlgmr.msra.gmra.mxu1 %v94_v53  ;;  %233 = vmatpush.msra.mxu2 %v186_v1 }
  0x36   :  { %256 = vmatpush.msra.mxu3 %v202_v4 }
  0x37   :  { %234 = vmatpush.msra.mxu2 %v185_v3 }
  0x38   :  { %257 = vmatpush.msra.mxu3 %v201_v6 }
  0x39   :  { %235 = vmatpush.msra.mxu2 %v184_v5 }
  0x3a   :  { %258 = vmatpush.msra.mxu3 %v200_v7 }
  0x3c   :  { %153 = vmatmul.f32.gmra.mxu0 %v95_v0 }
  0x3d   :  { %176 = vmatmul.f32.gmra.mxu1 %v95_v0 }
  0xb1   :  { %v151_v11 = vpop.f32.mrf.mxu0 }
  0xb2   :  { %v174_v12 = vpop.f32.mrf.mxu1  ;;  %v152_v13 = vadd.f32 %v151_v11, %v130_v9 }
  0xb3   :  { %v175_v14 = vadd.f32 %v174_v12, %v131_v10 }
  0xb4   :  { %v180_v15 = vmax.f32 %v152_v13, 0.0 }
  0xb5   :  { %v181_v16 = vmax.f32 %v175_v14, 0.0 }
  0xb6   :  { %236 = vmatmul.f32.vlgmr.msra.gmra.mxu2 %v180_v15 }
  0xb7   :  { %259 = vmatmul.f32.vlgmr.msra.gmra.mxu3 %v181_v16 }
  0xb9   :  { %v154_v17 = vpop.f32.mrf.mxu0 }
  0xba   :  { %v177_v18 = vpop.f32.mrf.mxu1  ;;  %v155_v19 = vadd.f32 %v154_v17, %v130_v9 }
  0xbb   :  { %v178_v20 = vadd.f32 %v177_v18, %v131_v10 }
  0xbc   :  { %v182_v21 = vmax.f32 %v155_v19, 0.0 }
  0xbd   :  { %v183_v22 = vmax.f32 %v178_v20, 0.0 }
  0xbe   :  { %239 = vmatmul.f32.gmra.mxu2 %v182_v21 }
  0xbf   :  { %262 = vmatmul.f32.gmra.mxu3 %v183_v22 }
 0x139   :  { %v237_v24 = vpop.f32.mrf.mxu2 }
 0x13a   :  { %v260_v25 = vpop.f32.mrf.mxu3  ;;  %v238_v26 = vadd.f32 %v298_v23, %v237_v24 }
 0x13c   :  { %v261_v27 = vadd.f32 %v260_v25, %v238_v26 }
 0x13e   :  { %266 = vst [vmem:[#allocation10] sm:$0xff] %v261_v27 }
 0x141   :  { %v240_v28 = vpop.f32.mrf.mxu2 }
 0x142   :  { %v263_v29 = vpop.f32.mrf.mxu3  ;;  %v241_v30 = vadd.f32 %v298_v23, %v240_v28 }
 0x144   :  { %v264_v31 = vadd.f32 %v263_v29, %v241_v30 }
 0x146   :  { %267 = vst [vmem:[#allocation10 + $0x8] sm:$0xff] %v264_v31 }
 0x147   :  { %280 = dma.vmem_to_hbm [thread:$0]  %s273_s21, 256, %s275_s24, [#allocation4], %s428_s29, %s428_s29, %s429_s30  }
 0x148   :  { %425 = dma.done.wait [#allocation4], 256  }
 0x149   :  { %426 = vsyncadd [#allocation4], 4294967040 }
 0x14a   :  { %285 = vsyncpa [#allocation3], 1 }
 0x14b   :  { %286 = vsyncpa [#allocation6], 1 }
 0x14c   :  { %287 = vsyncpa [#allocation9], 1 }
 0x14d   :  { %288 = vsyncpa [#allocation4], 1 }

</bundles_post_ra>
